<compile_context>
chip_gen: v7x
topology: tpu7x:2x2x1
jax: 0.10.0
libtpu: 0.0.40
codegen_flags: <defaults>
</compile_context>

<pallas_src>
import jax
import jax.numpy as jnp
from jax.experimental import pallas as pl
from jax.experimental.pallas import tpu as pltpu

HIDDEN = 32      # config.hidden_size (small synthetic stand-in value)
OUT_D = 768      # embeddingHead output dim / LayerNorm dim
LN_EPS = 1e-5    # nn.LayerNorm default eps


# ----------------------------------------------------------------------------
# Kernels
# ----------------------------------------------------------------------------
def _layer_norm_768(y, gamma, beta):
    # One-pass statistics: a single pair of row reductions (sum, sum of sq).
    inv_d = jnp.float32(1.0 / OUT_D)
    s1 = jnp.sum(y, axis=-1, keepdims=True)
    s2 = jnp.sum(y * y, axis=-1, keepdims=True)
    mu = s1 * inv_d
    var = s2 * inv_d - mu * mu
    return (y - mu) * jax.lax.rsqrt(var + LN_EPS) * gamma + beta


def _first_token_head_kernel(x_ref, w_ref, c_ref, out_ref):
    # x_ref  : (TB, H)    bf16  first-token hidden states (only slice DMA'd)
    # w_ref  : (H, 768)   bf16  embeddingHead weight (pre-transposed)
    # c_ref  : (3, 768)   f32   packed [bias; ln_gamma; ln_beta]
    # out_ref: (TB, 768)  f32
    y = jnp.dot(x_ref[...], w_ref[...], preferred_element_type=jnp.float32)
    y = y + c_ref[0:1, :]
    out_ref[...] = _layer_norm_768(y, c_ref[1:2, :], c_ref[2:3, :])


def _masked_mean_head_kernel(enc_ref, mask_ref, w_ref, c_ref, out_ref):
    # enc_ref : (TB, S, H) bf16   mask_ref : (TB, S) f32
    enc = enc_ref[...].astype(jnp.float32)
    m = mask_ref[...]
    s = jnp.sum(enc * m[:, :, None], axis=1)                    # (TB, H)
    d = jnp.maximum(jnp.sum(m, axis=1, keepdims=True), 1.0)     # clamp: no NaN
    pooled = s * pl.reciprocal(d, approx=True)                  # EUP slot
    # TODO(synk): at production (S, H) sizes this masked sum could be pushed
    # onto the MXU as a batched dot_general; kept on the VPU at tiny shapes.
    y = jnp.dot(pooled.astype(jnp.bfloat16), w_ref[...],
                preferred_element_type=jnp.float32)
    y = y + c_ref[0:1, :]
    out_ref[...] = _layer_norm_768(y, c_ref[1:2, :], c_ref[2:3, :])


# ----------------------------------------------------------------------------
# Wrapper
# ----------------------------------------------------------------------------
def _pick_batch_tile(batch, bytes_per_row, budget=16 * 1024 * 1024):
    """Largest MXU-friendly batch tile dividing `batch` whose double-buffered
    input block stays inside a VMEM budget safe for all generations (v7x has
    only 64 MiB physical VMEM, so stay well below that)."""
    for tb in (256, 128, 64, 32, 16, 8):
        if batch % tb == 0 and 2 * tb * bytes_per_row <= budget:
            return tb
    return batch   # tiny / odd batches: one full-size block


def t5_head(enc_hidden, attention_mask, w, b, gamma, beta, *, use_mean=False):
    """Pooling + embeddingHead Linear + LayerNorm, fused in one Pallas call."""
    B, S, H = enc_hidden.shape
    assert w.shape == (H, OUT_D)

    w_bf16 = w.astype(jnp.bfloat16)
    consts = jnp.stack([b.astype(jnp.float32),
                        gamma.astype(jnp.float32),
                        beta.astype(jnp.float32)])               # (3, 768)

    if not use_mean:
        # First-token pooling: only the (B, H) slice of the encoder output is
        # streamed into the kernel (S x less HBM traffic); the attention mask
        # is unused on this path and is not passed at all.
        x0 = enc_hidden[:, 0, :].astype(jnp.bfloat16)            # (B, H)
        tb = _pick_batch_tile(B, bytes_per_row=H * 2)
        kernel = _first_token_head_kernel
        in_specs = [
            pl.BlockSpec((tb, H), lambda i: (i, 0)),
            pl.BlockSpec((H, OUT_D), lambda i: (0, 0)),
            pl.BlockSpec((3, OUT_D), lambda i: (0, 0)),
        ]
        args = (x0, w_bf16, consts)
        in_block_bytes = tb * H * 2 + H * OUT_D * 2 + 3 * OUT_D * 4
    else:
        enc_bf16 = enc_hidden.astype(jnp.bfloat16)               # no f32 upcast
        mask_f = attention_mask.astype(jnp.float32)
        tb = _pick_batch_tile(B, bytes_per_row=S * H * 2 + S * 4)
        kernel = _masked_mean_head_kernel
        in_specs = [
            pl.BlockSpec((tb, S, H), lambda i: (i, 0, 0)),
            pl.BlockSpec((tb, S), lambda i: (i, 0)),
            pl.BlockSpec((H, OUT_D), lambda i: (0, 0)),
            pl.BlockSpec((3, OUT_D), lambda i: (0, 0)),
        ]
        args = (enc_bf16, mask_f, w_bf16, consts)
        in_block_bytes = tb * (S * H * 2 + S * 4) + H * OUT_D * 2 + 3 * OUT_D * 4

    grid = (B // tb,)
    out_block_bytes = tb * OUT_D * 4
    vmem_limit = int(min(max(2 * (in_block_bytes + out_block_bytes) + (1 << 20),
                             8 * 1024 * 1024),
                         48 * 1024 * 1024))

    return pl.pallas_call(
        kernel,
        out_shape=jax.ShapeDtypeStruct((B, OUT_D), jnp.float32),
        grid=grid,
        in_specs=in_specs,
        out_specs=pl.BlockSpec((tb, OUT_D), lambda i: (i, 0)),
        compiler_params=pltpu.CompilerParams(
            dimension_semantics=("parallel",),
            vmem_limit_bytes=vmem_limit,
        ),
    )(*args)


# ----------------------------------------------------------------------------
# Deterministic parameter init + model glue (plain JAX)
# ----------------------------------------------------------------------------
def init_params(key, vocab_size=128, hidden=HIDDEN):
    k1, k2, k3 = jax.random.split(key, 3)
    return {
        # Stand-in for the T5 encoder token embedding (backbone untranslatable);
        # kept in bf16, like a real bf16 encoder output.
        "tok_emb": (0.02 * jax.random.normal(k1, (vocab_size, hidden),
                                             jnp.float32)).astype(jnp.bfloat16),
        # embeddingHead: nn.Linear(hidden, 768); _init_weights -> N(0, 0.02)
        "head_w": 0.02 * jax.random.normal(k2, (hidden, OUT_D), jnp.float32),
        "head_b": 0.01 * jax.random.normal(k3, (OUT_D,), jnp.float32),
        # nn.LayerNorm(768) default init (not touched by _init_weights)
        "ln_g": jnp.ones((OUT_D,), jnp.float32),
        "ln_b": jnp.zeros((OUT_D,), jnp.float32),
    }


def encoder_last_hidden_state(params, input_ids):
    # TODO(synk): the pretrained T5ForConditionalGeneration encoder/decoder has
    # no in-script Pallas equivalent; stand-in is a deterministic embedding lookup.
    return params["tok_emb"][input_ids]                       # (B, S, H) bf16


def t5_forward(params, input_ids, attention_mask, labels, mode, use_mean=False):
    enc = encoder_last_hidden_state(params, input_ids)
    emb = t5_head(enc, attention_mask,
                  params["head_w"], params["head_b"],
                  params["ln_g"], params["ln_b"],
                  use_mean=use_mean)
    if mode == "query":
        # TODO(synk): decoder cross-entropy loss of the T5 backbone not reproduced.
        decode_loss = jnp.float32(0.0)
        return emb, decode_loss
    elif mode == "passage":
        return emb
    raise ValueError(mode)


# ----------------------------------------------------------------------------
# Reference (plain JAX, mirrors the kernel's bf16 inputs)
# ----------------------------------------------------------------------------
def _head_reference(enc, mask, w, b, gamma, beta, use_mean):
    enc = enc.astype(jnp.float32)
    w = w.astype(jnp.bfloat16).astype(jnp.float32)   # mirror bf16 weight feed
    if use_mean:
        m = mask.astype(jnp.float32)
        s = jnp.sum(enc * m[:, :, None], axis=1)
        d = jnp.maximum(m.sum(axis=1, keepdims=True), 1.0)
        pooled = (s / d).astype(jnp.bfloat16).astype(jnp.float32)
    else:
        pooled = enc[:, 0, :]
    y = pooled @ w + b
    mu = y.mean(-1, keepdims=True)
    var = ((y - mu) ** 2).mean(-1, keepdims=True)
    return (y - mu) / jnp.sqrt(var + LN_EPS) * gamma + beta


# ----------------------------------------------------------------------------
if __name__ == "__main__":
    key = jax.random.PRNGKey(0)
    pkey, ikey = jax.random.split(key)

    B, S, VOCAB = 2, 8, 128
    params = init_params(pkey, vocab_size=VOCAB, hidden=HIDDEN)
    input_ids = jax.random.randint(ikey, (B, S), 0, VOCAB, dtype=jnp.int32)
    # ragged mask so the masked-mean path is actually exercised
    attention_mask = jnp.ones((B, S), jnp.int32).at[1, 6:].set(0)
    labels = input_ids  # unused by the stand-in backbone

    query, loss = t5_forward(params, input_ids, attention_mask, labels, "query")
    passage = t5_forward(params, input_ids, attention_mask, labels, "passage")
    mean_emb = t5_forward(params, input_ids, attention_mask, labels, "passage",
                          use_mean=True)
    jax.block_until_ready((query, loss, passage, mean_emb))

    assert query.shape == (B, OUT_D)
    assert passage.shape == (B, OUT_D)
    assert mean_emb.shape == (B, OUT_D)

    enc = encoder_last_hidden_state(params, input_ids)
    ref_first = _head_reference(enc, attention_mask, params["head_w"],
                                params["head_b"], params["ln_g"], params["ln_b"],
                                use_mean=False)
    ref_mean = _head_reference(enc, attention_mask, params["head_w"],
                               params["head_b"], params["ln_g"], params["ln_b"],
                               use_mean=True)
    assert jnp.allclose(query, ref_first, atol=1e-3, rtol=1e-3)
    assert jnp.allclose(passage, ref_first, atol=1e-3, rtol=1e-3)
    # masked-mean path uses the approximate EUP reciprocal -> looser tolerance
    assert jnp.allclose(mean_emb, ref_mean, atol=3e-2, rtol=3e-2)

    print("KERNEL_OK")
</pallas_src>

<mosaic_0001>
module attributes {stable_mosaic.version = 11 : i64} {
  func.func @_first_token_head_kernel(%arg0: i32, %arg1: memref<2x32xbf16, #tpu.memory_space<vmem>>, %arg2: memref<32x768xbf16, #tpu.memory_space<vmem>>, %arg3: memref<3x768xf32, #tpu.memory_space<vmem>>, %arg4: memref<2x768xf32, #tpu.memory_space<vmem>>) attributes {dimension_semantics = [#tpu.dimension_semantics<parallel>], iteration_bounds = array<i64: 1>, scalar_prefetch = 0 : i64, scratch_operands = 0 : i64, tpu.core_type = #tpu.core_type<tc>, window_params = [{transform_indices = @transform_0, window_bounds = array<i64: 2, 32>}, {pipeline_mode = #tpu.pipeline_mode<synchronous>, transform_indices = @transform_1, window_bounds = array<i64: 32, 768>}, {pipeline_mode = #tpu.pipeline_mode<synchronous>, transform_indices = @transform_2, window_bounds = array<i64: 3, 768>}, {transform_indices = @transform_3, window_bounds = array<i64: 2, 768>}]} {
    %c0 = arith.constant 0 : index
    %c0_0 = arith.constant 0 : index
    %0 = vector.load %arg1[%c0, %c0_0] : memref<2x32xbf16, #tpu.memory_space<vmem>>, vector<2x32xbf16>
    %c0_1 = arith.constant 0 : index
    %c0_2 = arith.constant 0 : index
    %1 = vector.load %arg2[%c0_1, %c0_2] : memref<32x768xbf16, #tpu.memory_space<vmem>>, vector<32x768xbf16>
    %cst = arith.constant dense<0.000000e+00> : vector<2x768xf32>
    %2 = tpu.matmul %0, %1, %cst {dimension_numbers = #tpu.dot_dimension_numbers<[1], [0], [0], [1], [0, 0, 1, 1], [], []>} : vector<2x32xbf16>, vector<32x768xbf16>, vector<2x768xf32> -> vector<2x768xf32>
    %c0_3 = arith.constant 0 : index
    %c0_4 = arith.constant 0 : index
    %3 = vector.load %arg3[%c0_3, %c0_4] : memref<3x768xf32, #tpu.memory_space<vmem>>, vector<1x768xf32>
    %4 = vector.broadcast %3 : vector<1x768xf32> to vector<2x768xf32>
    %5 = arith.addf %2, %4 : vector<2x768xf32>
    %c1 = arith.constant 1 : index
    %c0_5 = arith.constant 0 : index
    %6 = vector.load %arg3[%c1, %c0_5] : memref<3x768xf32, #tpu.memory_space<vmem>>, vector<1x768xf32>
    %c2 = arith.constant 2 : index
    %c0_6 = arith.constant 0 : index
    %7 = vector.load %arg3[%c2, %c0_6] : memref<3x768xf32, #tpu.memory_space<vmem>>, vector<1x768xf32>
    %cst_7 = arith.constant dense<0.000000e+00> : vector<2xf32>
    %8 = vector.multi_reduction <add>, %5, %cst_7 [1] : vector<2x768xf32> to vector<2xf32>
    %9 = vector.shape_cast %8 : vector<2xf32> to vector<2x1xf32>
    %10 = arith.mulf %5, %5 : vector<2x768xf32>
    %cst_8 = arith.constant dense<0.000000e+00> : vector<2xf32>
    %11 = vector.multi_reduction <add>, %10, %cst_8 [1] : vector<2x768xf32> to vector<2xf32>
    %12 = vector.shape_cast %11 : vector<2xf32> to vector<2x1xf32>
    %cst_9 = arith.constant 0.00130208337 : f32
    %13 = vector.broadcast %cst_9 : f32 to vector<2x1xf32>
    %14 = arith.mulf %9, %13 : vector<2x1xf32>
    %cst_10 = arith.constant 0.00130208337 : f32
    %15 = vector.broadcast %cst_10 : f32 to vector<2x1xf32>
    %16 = arith.mulf %12, %15 : vector<2x1xf32>
    %17 = arith.mulf %14, %14 : vector<2x1xf32>
    %18 = arith.subf %16, %17 : vector<2x1xf32>
    %19 = vector.broadcast %14 : vector<2x1xf32> to vector<2x768xf32>
    %20 = arith.subf %5, %19 : vector<2x768xf32>
    %cst_11 = arith.constant 9.99999974E-6 : f32
    %21 = vector.broadcast %cst_11 : f32 to vector<2x1xf32>
    %22 = arith.addf %18, %21 : vector<2x1xf32>
    %23 = math.rsqrt %22 : vector<2x1xf32>
    %24 = vector.broadcast %23 : vector<2x1xf32> to vector<2x768xf32>
    %25 = arith.mulf %20, %24 : vector<2x768xf32>
    %26 = vector.broadcast %6 : vector<1x768xf32> to vector<2x768xf32>
    %27 = arith.mulf %25, %26 : vector<2x768xf32>
    %28 = vector.broadcast %7 : vector<1x768xf32> to vector<2x768xf32>
    %29 = arith.addf %27, %28 : vector<2x768xf32>
    %c0_12 = arith.constant 0 : index
    %c0_13 = arith.constant 0 : index
    %30 = vector.load %arg4[%c0_12, %c0_13] : memref<2x768xf32, #tpu.memory_space<vmem>>, vector<2x768xf32>
    tpu.vector_store %arg4[%c0_12, %c0_13], %29 {strides = array<i32>} : memref<2x768xf32, #tpu.memory_space<vmem>>, vector<2x768xf32>,
    return
  }
  func.func @transform_0(%arg0: i32) -> (i32, i32) {
    %c0_i32 = arith.constant 0 : i32
    %c0_i32_0 = arith.constant 0 : i32
    return %arg0, %c0_i32 : i32, i32
  }
  func.func @transform_1(%arg0: i32) -> (i32, i32) {
    %c0_i32 = arith.constant 0 : i32
    %c0_i32_0 = arith.constant 0 : i32
    %c0_i32_1 = arith.constant 0 : i32
    return %c0_i32, %c0_i32_0 : i32, i32
  }
  func.func @transform_2(%arg0: i32) -> (i32, i32) {
    %c0_i32 = arith.constant 0 : i32
    %c0_i32_0 = arith.constant 0 : i32
    %c0_i32_1 = arith.constant 0 : i32
    return %c0_i32, %c0_i32_0 : i32, i32
  }
  func.func @transform_3(%arg0: i32) -> (i32, i32) {
    %c0_i32 = arith.constant 0 : i32
    %c0_i32_0 = arith.constant 0 : i32
    return %arg0, %c0_i32 : i32, i32
  }
}

</mosaic_0001>

<bundles_post_ra>
// kernel: tpu_custom_call.1
= control target key start
LH: loop header
LB: loop body
LE: loop exit
PB: predicated region body
PF: predicated region fallthrough
CT: control target
= control target key end

     0   :  { %8 = vsyncpa [#allocation3], 0  ;;  %s754_s0 = inlined_call_operand.hbm [shape: bf16[2,32], index: 0, kind: input, shape index: {}]   ;;  %s755_s1 = inlined_call_operand.hbm [shape: bf16[32,768], index: 1, kind: input, shape index: {}]   ;;  %s756_s2 = inlined_call_operand.hbm [shape: f32[3,768], index: 2, kind: input, shape index: {}]   ;;  %s757_s3 = inlined_call_operand.hbm [shape: f32[2,768], index: 3, kind: output, shape index: {}]  }
   0x1   :  { %9 = vsyncpa [#allocation6], 0 }
   0x2   :  { %10 = vsyncpa [#allocation4], 0  ;;  %s603_s12 = smov [#allocation5]   ;;  %s509_s16 = scalar_lea.hbm %s755_s1, 1536 }
   0x3   :  { %s26_s13 = sshll.u32 %s603_s12, 4  ;;  %p510_p0 = scmp.ne.s32.totalorder %s755_s1, %s509_s16  ;;  %s27_s13 = int_to_ptr.vmem [resolvable:$true] %s26_s13 }
   0x4   :  { %p513_p1 = scmp.lt.u32.totalorder %s509_s16, %s755_s1 }
   0x6   :  { %p515_p2 = pnand %p513_p1, %p510_p0 }
   0x8   :  { %518 = shalt.err (!%p515_p2)
}
   0x9   :  { %s519_s21 = scalar_lea.vmem %s27_s13, 1536  ;;  %p524_p4 = scmp.lt.s32.totalorder %s27_s13, %s27_s13 }
   0xa   :  { %p520_p3 = scmp.ne.s32.totalorder %s27_s13, %s519_s21  ;;  %p525_p5 = scmp.lt.s32.totalorder %s519_s21, %s519_s21 }
   0xc   :  { %p526_p6 = por %p525_p5, %p524_p4 }
   0xe   :  { %p527_p7 = pnand %p526_p6, %p520_p3 }
  0x10   :  { %530 = shalt.err (!%p527_p7)
}
  0x11   :  { %s604_s22 = smov 384   ;;  %s605_s23 = smov 24  }
  0x12   :  { %32 = dma.hbm_to_vmem [thread:$0]  %s755_s1, 1536, %s27_s13, [#allocation6], %s604_s22, %s604_s22, %s605_s23  }
  0x13   :  { %s606_s26 = smov [#allocation2]   ;;  %s607_s28 = smov [#allocation7]  }
  0x14   :  { %s17_s27 = sshll.u32 %s606_s26, 4  ;;  %s39_s29 = sshll.u32 %s607_s28, 4  ;;  %s18_s27 = int_to_ptr.vmem [resolvable:$true] %s17_s27  ;;  %s40_s29 = int_to_ptr.vmem [resolvable:$true] %s39_s29 }
  0x15   :  { %s531_s5 = scalar_lea.hbm %s754_s0, 16 }
  0x16   :  { %p532_p8 = scmp.ne.s32.totalorder %s754_s0, %s531_s5  ;;  %p535_p9 = scmp.lt.u32.totalorder %s531_s5, %s754_s0 }
  0x18   :  { %p537_p10 = pnand %p535_p9, %p532_p8 }
  0x1a   :  { %540 = shalt.err (!%p537_p10)
}
  0x1b   :  { %s541_s1 = scalar_lea.vmem %s18_s27, 16  ;;  %s545_s10 = scalar_lea.vmem %s18_s27, 32 }
  0x1c   :  { %p542_p11 = scmp.ne.s32.totalorder %s18_s27, %s541_s1  ;;  %p546_p12 = scmp.lt.s32.totalorder %s18_s27, %s18_s27 }
  0x1d   :  { %p547_p13 = scmp.lt.s32.totalorder %s545_s10, %s541_s1 }
  0x1f   :  { %p548_p0 = por %p547_p13, %p546_p12 }
  0x21   :  { %p549_p1 = pnand %p548_p0, %p542_p11 }
  0x23   :  { %552 = shalt.err (!%p549_p1)
}
  0x24   :  { %20 = dma.hbm_to_vmem [thread:$0]  %s754_s0, 16, %s18_s27, [#allocation3]  }
  0x25   :  { %s553_s15 = scalar_lea.hbm %s756_s2, 384 }
  0x26   :  { %p554_p2 = scmp.ne.s32.totalorder %s756_s2, %s553_s15  ;;  %p557_p3 = scmp.lt.u32.totalorder %s553_s15, %s756_s2 }
  0x28   :  { %p559_p4 = pnand %p557_p3, %p554_p2 }
  0x2a   :  { %562 = shalt.err (!%p559_p4)
}
  0x2b   :  { %s563_s20 = scalar_lea.vmem %s40_s29, 384  ;;  %p568_p6 = scmp.lt.s32.totalorder %s40_s29, %s40_s29 }
  0x2c   :  { %p564_p5 = scmp.ne.s32.totalorder %s40_s29, %s563_s20  ;;  %p569_p7 = scmp.lt.s32.totalorder %s563_s20, %s563_s20 }
  0x2e   :  { %p570_p8 = por %p569_p7, %p568_p6 }
  0x30   :  { %p571_p9 = pnand %p570_p8, %p564_p5 }
  0x32   :  { %574 = shalt.err (!%p571_p9)
}
  0x33   :  { %42 = dma.hbm_to_vmem [thread:$0]  %s756_s2, 384, %s40_s29, [#allocation6]  }
  0x34   :  { %597 = dma.done.wait [#allocation3], 16  }
  0x35   :  { %598 = vsyncadd [#allocation3], 4294967280 }
  0x36   :  { %599 = dma.done.wait [#allocation6], 1920  }
  0x37   :  { %600 = vsyncadd [#allocation6], 4294965376  ;;  %v608_v0 = vmov 0   ;;  %v489_v1 = vld [vmem:[#allocation5 + $0x4] ss:$24 sps:$4 sm:$0xff]   ;;  %vm158_vm0 = vcmask 261120   ;;  %v68_v14 = vlaneseq }
  0x38   :  { %194 = vmatprep.mubr.bf16.mxu0 %v608_v0  ;;  %235 = vmatprep.mubr.bf16.mxu1 %v608_v0  ;;  %v491_v2 = vld [vmem:[#allocation5] ss:$24 sps:$4 sm:$0xff]   ;;  %v492_v3 = vld [vmem:[#allocation5 + $0xc] ss:$24 sps:$4 sm:$0xff]   ;;  %v497_v6 = vld [vmem:[#allocation5 + $0x30] ss:$24 sps:$4 sm:$0xff]  }
  0x39   :  { %162 = vmatprep.subr.bf16.mxu0 %v489_v1  ;;  %v494_v4 = vld [vmem:[#allocation5 + $0x8] ss:$24 sps:$4 sm:$0xff]   ;;  %v495_v5 = vld [vmem:[#allocation5 + $0x34] ss:$24 sps:$4 sm:$0xff]   ;;  %203 = vmatprep.subr.bf16.mxu1 %v492_v3  ;;  %v500_v8 = vld [vmem:[#allocation5 + $0x38] ss:$24 sps:$4 sm:$0xff]  }
  0x3a   :  { %163 = vmatpush1.bf16.msra.mxu0 %v491_v2  ;;  %v498_v7 = vld [vmem:[#allocation5 + $0x3c] ss:$24 sps:$4 sm:$0xff]   ;;  %204 = vmatpush1.bf16.msra.mxu1 %v494_v4  ;;  %v501_v11 = vld [vmem:[#allocation5 + $0x10] ss:$24 sps:$4 sm:$0xff]   ;;  %v504_v13 = vld [vmem:[#allocation5 + $0x40] ss:$24 sps:$4 sm:$0xff]  }
  0x3b   :  { %164 = vmatprep.subr.bf16.mxu0 %v495_v5  ;;  %205 = vmatprep.subr.bf16.mxu1 %v498_v7  ;;  %v53_v9 = vld [vmem:[#allocation2] sm:$0x1]  ;;  %v503_v10 = vld [vmem:[#allocation5 + $0x14] ss:$24 sps:$4 sm:$0xff]   ;;  %v667_v15 = vshrl.u32 %v68_v14, 7  ;;  %vm289_vm1 = vcmask 1041408  }
  0x3c   :  { %v506_v12 = vld [vmem:[#allocation5 + $0x44] ss:$24 sps:$4 sm:$0xff]   ;;  %s610_s2 = smov [#allocation8]  }
  0x3d   :  { %v670_v16 = vsub.s32 0, %v667_v15  ;;  %v66_v17 = vld [vmem:[#allocation7] ss:$4 sm:$0x3f]  ;;  %v673_v18 = vsub.s32 1, %v667_v15  ;;  %v676_v19 = vsub.s32 2, %v667_v15 }
  0x3e   :  { %165 = vmatpush1.bf16.msra.mxu0 %v497_v6  ;;  %206 = vmatpush1.bf16.msra.mxu1 %v500_v8  ;;  %v679_v20 = vsub.s32 3, %v667_v15  ;;  %v686_v26 = vsub.s32 4, %v667_v15  ;;  %v693_v32 = vsub.s32 5, %v667_v15  ;;  %s455_s22 = sshll.u32 %s610_s2, 4  ;;  %s456_s22 = int_to_ptr.vmem [resolvable:$true] %s455_s22 }
  0x3f   :  { %244 = vmatprep.subr.bf16.mxu0 %v503_v10  ;;  %v71_v21 = vrot.slane %v66_v17, %v670_v16  ;;  %v75_v22 = vrot.slane %v66_v17, %v673_v18  ;;  %v79_v23 = vrot.slane %v66_v17, %v676_v19  ;;  %s575_s23 = scalar_lea.vmem %s456_s22, 192  ;;  %p580_p11 = scmp.lt.s32.totalorder %s456_s22, %s456_s22 }
  0x40   :  { %v83_v25 = vrot.slane %v66_v17, %v679_v20  ;;  %v87_v42 = vrot.slane %v66_v17, %v686_v26  ;;  %v91_v50 = vrot.slane %v66_v17, %v693_v32  ;;  %p576_p10 = scmp.ne.s32.totalorder %s456_s22, %s575_s23  ;;  %p581_p12 = scmp.lt.s32.totalorder %s575_s23, %s575_s23 }
  0x41   :  { %477 = vmatmul.mubr.msk.bf16.vlgmr.msra.gmra.mrb[0].mxu0 %vm158_vm0, %v53_v9  ;;  %478 = vmatmul.mubr.msk.bf16.vlgmr.msra.gmra.mrb[0].mxu1 %vm158_vm0, %v53_v9 }
  0x42   :  { %245 = vmatpush1.bf16.msra.mxu0 %v501_v11  ;;  %276 = vmatprep.mubr.bf16.mxu0 %v608_v0  ;;  %p582_p13 = por %p581_p12, %p580_p11 }
  0x43   :  { %246 = vmatprep.subr.bf16.mxu0 %v506_v12 }
  0x44   :  { %p583_p0 = pnand %p582_p13, %p576_p10 }
  0x46   :  { %247 = vmatpush1.bf16.msra.mxu0 %v504_v13 }
  0x49   :  { %479 = vmatmul.mubr.msk.bf16.vlgmr.msra.gmra.mrb[4].mxu0 %vm158_vm0, %v53_v9 }
 0x114   :  { %v196_v24 = vpop.f32.mrb[0].mxu0  ;;  %v237_v31 = vpop.f32.mrb[0].mxu1 }
 0x115   :  { %v688_v27 = vadd.f32 %v196_v24, %v71_v21  ;;  %v198_v28 = vpop.f32.mrb[1].mxu0  ;;  %v699_v35 = vadd.f32 %v237_v31, %v79_v23  ;;  %v239_v37 = vpop.f32.mrb[1].mxu1  ;;  %v286_v23 = vld [vmem:[#allocation7 + $0x1] ss:$4 sm:$0x3f] }
 0x116   :  { %v690_v29 = vadd.f32 %v198_v28, %v75_v22  ;;  %v200_v30 = vpop.f32.mrb[2].mxu0  ;;  %v705_v40 = vadd.f32 %v239_v37, %v83_v25  ;;  %v241_v41 = vpop.f32.mrb[2].mxu1  ;;  %v288_v24 = vld [vmem:[#allocation7 + $0x2] ss:$4 sm:$0x3f]  ;;  %v344_v25 = vrot.slane %v286_v23, %v670_v16 }
 0x117   :  { %v290_v33 = vsel %vm289_vm1, %v688_v27, 0.0  ;;  %v303_v34 = vmul.f32 %v688_v27, %v688_v27  ;;  %v201_v36 = vpop.f32.mrb[3].mxu0  ;;  %v293_v45 = vsel %vm289_vm1, %v699_v35, 0.0  ;;  %v305_v46 = vmul.f32 %v699_v35, %v699_v35  ;;  %v242_v47 = vpop.f32.mrb[3].mxu1 }
 0x118   :  { %v291_v38 = vsel %vm289_vm1, %v690_v29, 0.0  ;;  %v304_v39 = vmul.f32 %v690_v29, %v690_v29  ;;  %v306_v49 = vmul.f32 %v705_v40, %v705_v40  ;;  %v295_v51 = vsel %vm289_vm1, %v705_v40, 0.0 }
 0x119   :  { %v309_v43 = vsel %vm289_vm1, %v303_v34, 0.0  ;;  %v292_v44 = vadd.f32 %v291_v38, %v290_v33  ;;  %v312_v53 = vsel %vm289_vm1, %v305_v46, 0.0  ;;  %v609_v28 = vmov 1983009808  }
 0x11a   :  { %v310_v48 = vsel %vm289_vm1, %v304_v39, 0.0  ;;  %v314_v56 = vsel %vm289_vm1, %v306_v49, 0.0  ;;  %v423_v30 = vunpack.c.l.s4 %v609_v28  ;;  %v381_v31 = vrot.slane %v288_v24, %v670_v16 }
 0x11b   :  { %v311_v52 = vadd.f32 %v310_v48, %v309_v43  ;;  %v294_v54 = vadd.f32 %v293_v45, %v292_v44  ;;  %v348_v33 = vrot.slane %v286_v23, %v673_v18  ;;  %v385_v34 = vrot.slane %v288_v24, %v673_v18 }
 0x11c   :  { %v278_v55 = vpop.f32.mrb[4].mxu0  ;;  %v352_v36 = vrot.slane %v286_v23, %v676_v19  ;;  %v389_v37 = vrot.slane %v288_v24, %v676_v19  ;;  %v356_v38 = vrot.slane %v286_v23, %v679_v20  ;;  %v393_v39 = vrot.slane %v288_v24, %v679_v20 }
 0x11d   :  { %v279_v57 = vadd.f32 %v278_v55, %v87_v42  ;;  %v280_v58 = vpop.f32.mrb[5].mxu0  ;;  %v296_v59 = vadd.f32 %v295_v51, %v294_v54  ;;  %v313_v60 = vadd.f32 %v312_v53, %v311_v52  ;;  %v360_v41 = vrot.slane %v286_v23, %v686_v26 }
 0x11e   :  { %v281_v61 = vadd.f32 %v280_v58, %v91_v50  ;;  %v282_v62 = vpop.f32.mrb[6].mxu0  ;;  %v364_v47 = vrot.slane %v286_v23, %v693_v32  ;;  %v424_v19 = vunpack.c.0.s8 %v423_v30 }
 0x11f   :  { %v307_v63 = vmul.f32 %v279_v57, %v279_v57  ;;  %v283_v0 = vpop.f32.mrb[7].mxu0  ;;  %v297_v1 = vsel %vm289_vm1, %v279_v57, 0.0  ;;  %v315_v2 = vadd.f32 %v314_v56, %v313_v60 }
 0x120   :  { %v298_v3 = vadd.f32 %v297_v1, %v296_v59  ;;  %v299_v4 = vsel %vm289_vm1, %v281_v61, 0.0  ;;  %v308_v5 = vmul.f32 %v281_v61, %v281_v61 }
 0x121   :  { %v316_v6 = vsel %vm289_vm1, %v307_v63, 0.0 }
 0x122   :  { %v300_v7 = vadd.f32 %v299_v4, %v298_v3  ;;  %v317_v8 = vadd.f32 %v316_v6, %v315_v2  ;;  %v318_v9 = vsel %vm289_vm1, %v308_v5, 0.0 }
 0x124   :  { %301 = vadd.xlane.f32.xlu0 %v300_v7  ;;  %v319_v10 = vadd.f32 %v318_v9, %v317_v8 }
 0x128   :  { %320 = vadd.xlane.f32.xlu0 %v319_v10 }
 0x1b1   :  { %v302_v11 = vpop.xlane.xlu0 %301 }
 0x1b2   :  { %v322_v12 = vmul.f32 0.0013020834, %v302_v11 }
 0x1b4   :  { %v324_v14 = vmul.f32 %v322_v12, %v322_v12  ;;  %v326_v42 = vsub.f32 %v688_v27, %v322_v12  ;;  %v327_v43 = vsub.f32 %v690_v29, %v322_v12  ;;  %v328_v16 = vsub.f32 %v699_v35, %v322_v12 }
 0x1b5   :  { %v321_v13 = vpop.xlane.xlu0 %320  ;;  %v329_v44 = vsub.f32 %v705_v40, %v322_v12  ;;  %v330_v18 = vsub.f32 %v279_v57, %v322_v12  ;;  %v331_v46 = vsub.f32 %v281_v61, %v322_v12  ;;  %v397_v27 = vrot.slane %v288_v24, %v686_v26 }
 0x1b6   :  { %v323_v17 = vmul.f32 0.0013020834, %v321_v13  ;;  %v401_v29 = vrot.slane %v288_v24, %v693_v32  ;;  %v427_v57 = vsub.s32 %v424_v19, %v667_v15 }
 0x1b8   :  { %v325_v21 = vsub.f32 %v323_v17, %v324_v14 }
 0x1ba   :  { %v332_v22 = vadd.f32 1e-05, %v325_v21 }
 0x1bc   :  { %507 = vrsqrt.f32 %v332_v22 }
 0x1c6   :  { %v508_v45 = vpop.eup %507 }
 0x1c7   :  { %v334_v48 = vmul.f32 %v508_v45, %v326_v42  ;;  %v335_v49 = vmul.f32 %v508_v45, %v327_v43  ;;  %v336_v50 = vmul.f32 %v508_v45, %v328_v16  ;;  %v337_v20 = vmul.f32 %v508_v45, %v329_v44 }
 0x1c8   :  { %v338_v51 = vmul.f32 %v508_v45, %v330_v18  ;;  %v339_v52 = vmul.f32 %v508_v45, %v331_v46 }
 0x1c9   :  { %v371_v53 = vmul.f32 %v344_v25, %v334_v48  ;;  %v372_v35 = vmul.f32 %v348_v33, %v335_v49  ;;  %v373_v54 = vmul.f32 %v352_v36, %v336_v50  ;;  %v374_v40 = vmul.f32 %v356_v38, %v337_v20 }
 0x1ca   :  { %v375_v55 = vmul.f32 %v360_v41, %v338_v51  ;;  %v376_v56 = vmul.f32 %v364_v47, %v339_v52 }
 0x1cb   :  { %v408_v58 = vadd.f32 %v381_v31, %v371_v53  ;;  %v409_v59 = vadd.f32 %v385_v34, %v372_v35  ;;  %v410_v60 = vadd.f32 %v389_v37, %v373_v54  ;;  %v411_v61 = vadd.f32 %v393_v39, %v374_v40 }
 0x1cc   :  { %v412_v62 = vadd.f32 %v397_v27, %v375_v55  ;;  %v413_v63 = vadd.f32 %v401_v29, %v376_v56 }
 0x1cd   :  { %v420_v0 = vcombine.low %v408_v58, %v409_v59  ;;  %v421_v1 = vcombine.low %v410_v60, %v411_v61 }
 0x1ce   :  { %v437_v2 = vcombine.low %v412_v62, %v413_v63 }
 0x1cf   :  { %v428_v26 = vrot.slane %v420_v0, %v427_v57  ;;  %v435_v32 = vrot.slane %v421_v1, %v427_v57 }
 0x1d0   :  { %480 = vst.sshfl [vmem:[#allocation8 + $0x8] sm:$0x33 pattern:$0x76325410] %v437_v2 }
 0x1d1   :  { %v436_v3 = vcombine.low %v428_v26, %v435_v32 }
 0x1d3   :  { %447 = vst [vmem:[#allocation8] sm:$0xff] %v436_v3 }
 0x1d4   :  { %586 = shalt.err (!%p583_p0)
}
 0x1d5   :  { %s587_s26 = scalar_lea.hbm %s757_s3, 192 }
 0x1d6   :  { %p588_p1 = scmp.ne.s32.totalorder %s757_s3, %s587_s26  ;;  %p591_p2 = scmp.lt.u32.totalorder %s587_s26, %s757_s3 }
 0x1d8   :  { %p593_p3 = pnand %p591_p2, %p588_p1 }
 0x1da   :  { %596 = shalt.err (!%p593_p3)
}
 0x1db   :  { %458 = dma.vmem_to_hbm [thread:$0]  %s456_s22, 192, %s757_s3, [#allocation4]  }
 0x1dc   :  { %601 = dma.done.wait [#allocation4], 192  }
 0x1dd   :  { %602 = vsyncadd [#allocation4], 4294967104 }
 0x1de   :  { %462 = vsyncpa [#allocation3], 1 }
 0x1df   :  { %463 = vsyncpa [#allocation6], 1 }
 0x1e0   :  { %464 = vsyncpa [#allocation4], 1 }

</bundles_post_ra>
